<compile_context>
chip_gen: v7x
topology: tpu7x:2x2x1
jax: 0.10.0
libtpu: 0.0.40
codegen_flags: <defaults>
</compile_context>

<pallas_src>
import math

import jax
import jax.numpy as jnp
from jax.experimental import pallas as pl
from jax.experimental.pallas import tpu as pltpu

_LANE = 128
_SUBLANE = 8


def _round_up(x, m):
    return ((x + m - 1) // m) * m


def _vmem_budget_bytes():
    """~80% of this generation's physical VMEM (leaves headroom for Mosaic scratch)."""
    try:
        cap = pltpu.get_tpu_info().vmem_capacity_bytes
    except Exception:
        cap = 64 * 1024 * 1024  # conservative fallback (v7x-sized VMEM)
    return int(0.8 * cap)


# ------------------------------ kernels ------------------------------

def _gcn_kernel_bias(x_ref, w_ref, adj_ref, b_ref, o_ref):
    # support = x @ W on the MXU, f32 accumulation.
    support = jnp.dot(x_ref[...], w_ref[...], preferred_element_type=jnp.float32)
    # output = support @ adj (adj dense; downcast of support to compute dtype is
    # intentional when running bf16 operands -- see header note).
    out = jnp.dot(support.astype(adj_ref.dtype), adj_ref[...],
                  preferred_element_type=jnp.float32)
    o_ref[...] = (out + b_ref[...].astype(jnp.float32)).astype(o_ref.dtype)


def _gcn_kernel_nobias(x_ref, w_ref, adj_ref, o_ref):
    support = jnp.dot(x_ref[...], w_ref[...], preferred_element_type=jnp.float32)
    out = jnp.dot(support.astype(adj_ref.dtype), adj_ref[...],
                  preferred_element_type=jnp.float32)
    o_ref[...] = out.astype(o_ref.dtype)


def _gcn_kernel_kred_bias(x_ref, w_ref, adj_ref, b_ref, o_ref, sup_ref):
    # K (in_features) reduction axis: accumulate full-width `support` in f32 scratch,
    # apply adj + bias only on the last K step (output block index is constant in k,
    # so the writeback only happens after the final step).
    k = pl.program_id(1)

    @pl.when(k == 0)
    def _():
        sup_ref[...] = jnp.zeros_like(sup_ref)

    sup_ref[...] += jnp.dot(x_ref[...], w_ref[...], preferred_element_type=jnp.float32)

    @pl.when(k == pl.num_programs(1) - 1)
    def _():
        out = jnp.dot(sup_ref[...].astype(adj_ref.dtype), adj_ref[...],
                      preferred_element_type=jnp.float32)
        o_ref[...] = (out + b_ref[...].astype(jnp.float32)).astype(o_ref.dtype)


def _gcn_kernel_kred_nobias(x_ref, w_ref, adj_ref, o_ref, sup_ref):
    k = pl.program_id(1)

    @pl.when(k == 0)
    def _():
        sup_ref[...] = jnp.zeros_like(sup_ref)

    sup_ref[...] += jnp.dot(x_ref[...], w_ref[...], preferred_element_type=jnp.float32)

    @pl.when(k == pl.num_programs(1) - 1)
    def _():
        out = jnp.dot(sup_ref[...].astype(adj_ref.dtype), adj_ref[...],
                      preferred_element_type=jnp.float32)
        o_ref[...] = out.astype(o_ref.dtype)


# ------------------------------ wrapper ------------------------------

def graph_convolution(x, weight, adj, bias=None, *, tm=None, tk=None,
                      use_bf16=True, force_pallas=False):
    """Pallas forward for GraphConvolution.

    x:      (N, in_features)
    weight: (in_features, out_features)
    adj:    (out_features, out_features) dense (torch.spmm(support, adj) semantics)
    bias:   (out_features,) or None
    returns (N, out_features) with x.dtype
    """
    n, in_f = x.shape
    in_f_w, out_f = weight.shape
    assert in_f == in_f_w
    # The module computes spmm(support, adj) then `+ bias`, so adj must be square
    # (out_f, out_f) for the broadcast to be well-defined.
    assert adj.shape == (out_f, out_f)

    def _xla():
        out = (x @ weight) @ adj
        return out + bias if bias is not None else out

    # Tiny problems: a fused XLA dot beats the Pallas invocation overhead.
    if not force_pallas and (n * out_f * max(in_f, out_f)) < (1 << 18):
        return _xla()

    out_dtype = x.dtype
    compute_dtype = jnp.bfloat16 if use_bf16 else x.dtype
    itemsize = jnp.dtype(compute_dtype).itemsize
    out_itemsize = jnp.dtype(out_dtype).itemsize

    out_p = _round_up(out_f, _LANE)          # lane padding of the feature dims only
    in_p0 = _round_up(in_f, _LANE)

    budget = _vmem_budget_bytes()
    slack = 2 * 1024 * 1024                  # Mosaic internal scratch headroom
    adj_bytes = itemsize * out_p * out_p
    bias_bytes = 4 * out_p

    # adj must stay VMEM-resident in this kernel (budgeted at worst-case 2 buffers).
    # TODO(synk): stream adj column tiles from HBM (extra grid axis / emit_pipeline)
    #             for out_f large enough that adj alone blows the VMEM budget.
    avail = budget - slack - 2 * adj_bytes - bias_bytes
    if avail <= 0:
        return _xla()

    # ---- K (in_features) tile: keep W fully resident when it fits, else stream it ----
    if tk is None:
        if 4 * itemsize * in_p0 * out_p <= avail:   # 2 bufs of full W <= half the headroom
            tk_eff = in_p0
        else:
            tk_eff = ((avail // 2) // (2 * itemsize * out_p)) // _LANE * _LANE
            tk_eff = int(min(in_p0, max(_LANE, tk_eff)))
    else:
        tk_eff = int(min(_round_up(tk, _LANE), in_p0))
    in_p = _round_up(in_f, tk_eff)           # tk must divide the (zero-)padded K extent
    n_k = in_p // tk_eff

    # ---- Row tile from remaining VMEM headroom; >= 2 row tiles for the v7x megacore ----
    x_bufs = 3 if (tk_eff <= 256 and out_p <= 256) else 2   # deeper pipeline when DMA-bound
    per_row = (x_bufs * itemsize * tk_eff        # x tile buffers
               + 2 * out_itemsize * out_p        # output tile (double buffered)
               + 8 * out_p)                      # f32 support + f32 result temporaries
    avail_rows = avail - 2 * itemsize * tk_eff * out_p
    if tm is None:
        tm_eff = int(max(_SUBLANE, min(2048, avail_rows // per_row)))
    else:
        tm_eff = int(max(_SUBLANE, tm))
    tm_eff = min(tm_eff, _round_up(n, _SUBLANE))
    if n > 2 * _SUBLANE and pl.cdiv(n, tm_eff) < 2:
        tm_eff = _round_up(pl.cdiv(n, 2), _SUBLANE)   # at least 2 steps -> both v7x TCs busy
    tm_eff = _round_up(tm_eff, _SUBLANE)
    n_i = pl.cdiv(n, tm_eff)

    # ---- prepare operands (skip pad/cast when they are no-ops; never pad rows of x) ----
    def _prep2(a, rows, cols):
        if a.dtype != compute_dtype:
            a = a.astype(compute_dtype)
        if a.shape != (rows, cols):
            a = jnp.pad(a, ((0, rows - a.shape[0]), (0, cols - a.shape[1])))
        return a

    x_p = _prep2(x, n, in_p)                 # rows stay exactly n
    w_p = _prep2(weight, in_p, out_p)
    adj_p = _prep2(adj, out_p, out_p)

    args = [x_p, w_p, adj_p]
    has_bias = bias is not None
    if has_bias:
        b_p = bias.astype(jnp.float32).reshape(1, out_f)   # bias add stays f32
        if out_p != out_f:
            b_p = jnp.pad(b_p, ((0, 0), (0, out_p - out_f)))
        args.append(b_p)

    flops = 2 * n * in_p * out_p + 2 * n * out_p * out_p
    bytes_accessed = int(itemsize * (n * in_p + in_p * out_p + out_p * out_p)
                         + out_itemsize * n * out_p
                         + (4 * out_p if has_bias else 0))
    cost = pl.CostEstimate(flops=flops, transcendentals=0,
                           bytes_accessed=bytes_accessed)

    def _call(use_pipeline_modes):
        def _spec(shape, index_map, bufs=None):
            if use_pipeline_modes and bufs is not None:
                return pl.BlockSpec(shape, index_map, pipeline_mode=pl.Buffered(bufs))
            return pl.BlockSpec(shape, index_map)

        if n_k == 1:
            # Single resident weight: 1-D row grid, no scratch.
            grid = (n_i,)
            dims = ("parallel",)
            in_specs = [
                _spec((tm_eff, in_p), lambda i: (i, 0),
                      bufs=x_bufs if x_bufs != 2 else None),        # x row tiles
                _spec((in_p, out_p), lambda i: (0, 0), bufs=1),     # W resident, 1 buffer
                _spec((out_p, out_p), lambda i: (0, 0), bufs=1),    # adj resident, 1 buffer
            ]
            if has_bias:
                in_specs.append(_spec((1, out_p), lambda i: (0, 0), bufs=1))
            out_spec = pl.BlockSpec((tm_eff, out_p), lambda i: (i, 0))
            scratch = ()
            kernel = _gcn_kernel_bias if has_bias else _gcn_kernel_nobias
        else:
            # K-reduction grid: stream W in (tk, out_p) slabs, f32 support scratch.
            grid = (n_i, n_k)
            dims = ("parallel", "arbitrary")
            in_specs = [
                _spec((tm_eff, tk_eff), lambda i, k: (i, k),
                      bufs=x_bufs if x_bufs != 2 else None),
                _spec((tk_eff, out_p), lambda i, k: (k, 0)),         # streamed W slabs
                _spec((out_p, out_p), lambda i, k: (0, 0), bufs=1),  # adj resident
            ]
            if has_bias:
                in_specs.append(_spec((1, out_p), lambda i, k: (0, 0), bufs=1))
            out_spec = pl.BlockSpec((tm_eff, out_p), lambda i, k: (i, 0))
            scratch = (pltpu.VMEM((tm_eff, out_p), jnp.float32),)
            kernel = _gcn_kernel_kred_bias if has_bias else _gcn_kernel_kred_nobias

        return pl.pallas_call(
            kernel,
            out_shape=jax.ShapeDtypeStruct((n, out_p), out_dtype),
            grid_spec=pltpu.PrefetchScalarGridSpec(
                num_scalar_prefetch=0,
                grid=grid,
                in_specs=in_specs,
                out_specs=out_spec,
                scratch_shapes=scratch,
            ),
            compiler_params=pltpu.CompilerParams(
                dimension_semantics=dims,
                vmem_limit_bytes=budget,
            ),
            cost_estimate=cost,
        )(*args)

    try:
        out_padded = _call(True)
    except Exception:
        # pipeline_mode / pl.Buffered may be unsupported on this jax build;
        # retry with default double-buffering (VMEM budget already covers it).
        out_padded = _call(False)

    # Rows were never padded; only slice lane padding off (skipped when aligned).
    return out_padded if out_p == out_f else out_padded[:, :out_f]


# ------------------------------ demo / self-test ------------------------------

if __name__ == "__main__":
    # Small, deterministic synthetic setup consistent with the module.
    N = 300       # number of nodes (exercises the ragged last row block, no row padding)
    IN_F = 48     # in_features
    OUT_F = 32    # out_features (adj is (OUT_F, OUT_F) so `+ bias` broadcasts)

    key = jax.random.PRNGKey(0)
    kx, kadj, kw, kb = jax.random.split(key, 4)

    # reset_parameters(): uniform(-stdv, stdv) with stdv = 1/sqrt(out_features)
    stdv = 1.0 / math.sqrt(OUT_F)
    weight = jax.random.uniform(kw, (IN_F, OUT_F), jnp.float32, minval=-stdv, maxval=stdv)
    bias = jax.random.uniform(kb, (OUT_F,), jnp.float32, minval=-stdv, maxval=stdv)
    x = jax.random.normal(kx, (N, IN_F), jnp.float32)
    adj = jax.random.uniform(kadj, (OUT_F, OUT_F), jnp.float32)

    ref = (x @ weight) @ adj + bias
    ref_nb = (x @ weight) @ adj

    # 1) f32 path with bias (tight check; auto tm -> 2 row tiles for the megacore).
    out = graph_convolution(x, weight, adj, bias, use_bf16=False, force_pallas=True)
    out = jax.block_until_ready(out)
    assert out.shape == (N, OUT_F)
    assert jnp.allclose(out, ref, atol=1e-3, rtol=1e-3)

    # 2) default bf16-operand MXU path with bias (f32 accumulation; loose tolerance,
    #    since the f32 `support` is downcast to bf16 between the two matmuls).
    out_bf = graph_convolution(x, weight, adj, bias, force_pallas=True)
    out_bf = jax.block_until_ready(out_bf)
    assert out_bf.shape == (N, OUT_F)
    assert jnp.allclose(out_bf, ref, atol=2.5e-1, rtol=3e-2)

    # 3) no-bias f32 path (separate kernel variant, no zeros array DMA'd).
    out_nb = graph_convolution(x, weight, adj, None, use_bf16=False, force_pallas=True)
    out_nb = jax.block_until_ready(out_nb)
    assert jnp.allclose(out_nb, ref_nb, atol=1e-3, rtol=1e-3)

    # 4) K-reduction path: wider in_features with a forced small tk -> grid (rows, K).
    IN_F2 = 320
    kw2, kx2 = jax.random.split(kb, 2)
    w2 = jax.random.uniform(kw2, (IN_F2, OUT_F), jnp.float32, minval=-stdv, maxval=stdv)
    x2 = jax.random.normal(kx2, (N, IN_F2), jnp.float32)
    out2 = graph_convolution(x2, w2, adj, bias, use_bf16=False, tk=128, force_pallas=True)
    out2 = jax.block_until_ready(out2)
    ref2 = (x2 @ w2) @ adj + bias
    assert jnp.allclose(out2, ref2, atol=2e-3, rtol=2e-3)

    print("KERNEL_OK")
</pallas_src>

<mosaic_0001>
module attributes {stable_mosaic.version = 11 : i64} {
  func.func @_gcn_kernel_bias(%arg0: i32, %arg1: memref<152x128xf32, #tpu.memory_space<vmem>>, %arg2: memref<128x128xf32, #tpu.memory_space<vmem>>, %arg3: memref<128x128xf32, #tpu.memory_space<vmem>>, %arg4: memref<1x128xf32, #tpu.memory_space<vmem>>, %arg5: memref<152x128xf32, #tpu.memory_space<vmem>>) attributes {dimension_semantics = [#tpu.dimension_semantics<parallel>], iteration_bounds = array<i64: 2>, scalar_prefetch = 0 : i64, scratch_operands = 0 : i64, tpu.core_type = #tpu.core_type<tc>, window_params = [{transform_indices = @transform_0, window_bounds = array<i64: 152, 128>}, {pipeline_mode = #tpu.pipeline_mode<synchronous>, transform_indices = @transform_1, window_bounds = array<i64: 128, 128>}, {pipeline_mode = #tpu.pipeline_mode<synchronous>, transform_indices = @transform_2, window_bounds = array<i64: 128, 128>}, {pipeline_mode = #tpu.pipeline_mode<synchronous>, transform_indices = @transform_3, window_bounds = array<i64: 1, 128>}, {transform_indices = @transform_4, window_bounds = array<i64: 152, 128>}]} {
    %c0 = arith.constant 0 : index
    %c0_0 = arith.constant 0 : index
    %0 = vector.load %arg1[%c0, %c0_0] : memref<152x128xf32, #tpu.memory_space<vmem>>, vector<152x128xf32>
    %c0_1 = arith.constant 0 : index
    %c0_2 = arith.constant 0 : index
    %1 = vector.load %arg2[%c0_1, %c0_2] : memref<128x128xf32, #tpu.memory_space<vmem>>, vector<128x128xf32>
    %cst = arith.constant dense<0.000000e+00> : vector<152x128xf32>
    %2 = tpu.matmul %0, %1, %cst {dimension_numbers = #tpu.dot_dimension_numbers<[1], [0], [0], [1], [0, 0, 1, 1], [], []>} : vector<152x128xf32>, vector<128x128xf32>, vector<152x128xf32> -> vector<152x128xf32>
    %c0_3 = arith.constant 0 : index
    %c0_4 = arith.constant 0 : index
    %3 = vector.load %arg3[%c0_3, %c0_4] : memref<128x128xf32, #tpu.memory_space<vmem>>, vector<128x128xf32>
    %cst_5 = arith.constant dense<0.000000e+00> : vector<152x128xf32>
    %4 = tpu.matmul %2, %3, %cst_5 {dimension_numbers = #tpu.dot_dimension_numbers<[1], [0], [0], [1], [0, 0, 1, 1], [], []>} : vector<152x128xf32>, vector<128x128xf32>, vector<152x128xf32> -> vector<152x128xf32>
    %c0_6 = arith.constant 0 : index
    %c0_7 = arith.constant 0 : index
    %5 = vector.load %arg4[%c0_6, %c0_7] : memref<1x128xf32, #tpu.memory_space<vmem>>, vector<1x128xf32>
    %6 = vector.broadcast %5 : vector<1x128xf32> to vector<152x128xf32>
    %7 = arith.addf %4, %6 : vector<152x128xf32>
    %c0_8 = arith.constant 0 : index
    %c0_9 = arith.constant 0 : index
    %8 = vector.load %arg5[%c0_8, %c0_9] : memref<152x128xf32, #tpu.memory_space<vmem>>, vector<152x128xf32>
    tpu.vector_store %arg5[%c0_8, %c0_9], %7 {strides = array<i32>} : memref<152x128xf32, #tpu.memory_space<vmem>>, vector<152x128xf32>,
    return
  }
  func.func @transform_0(%arg0: i32) -> (i32, i32) {
    %c0_i32 = arith.constant 0 : i32
    %c0_i32_0 = arith.constant 0 : i32
    return %arg0, %c0_i32 : i32, i32
  }
  func.func @transform_1(%arg0: i32) -> (i32, i32) {
    %c0_i32 = arith.constant 0 : i32
    %c0_i32_0 = arith.constant 0 : i32
    %c0_i32_1 = arith.constant 0 : i32
    return %c0_i32, %c0_i32_0 : i32, i32
  }
  func.func @transform_2(%arg0: i32) -> (i32, i32) {
    %c0_i32 = arith.constant 0 : i32
    %c0_i32_0 = arith.constant 0 : i32
    %c0_i32_1 = arith.constant 0 : i32
    return %c0_i32, %c0_i32_0 : i32, i32
  }
  func.func @transform_3(%arg0: i32) -> (i32, i32) {
    %c0_i32 = arith.constant 0 : i32
    %c0_i32_0 = arith.constant 0 : i32
    %c0_i32_1 = arith.constant 0 : i32
    return %c0_i32, %c0_i32_0 : i32, i32
  }
  func.func @transform_4(%arg0: i32) -> (i32, i32) {
    %c0_i32 = arith.constant 0 : i32
    %c0_i32_0 = arith.constant 0 : i32
    return %arg0, %c0_i32 : i32, i32
  }
}

</mosaic_0001>

<bundles_post_ra>
// kernel: tpu_custom_call.1
= control target key start
LH: loop header
LB: loop body
LE: loop exit
PB: predicated region body
PF: predicated region fallthrough
CT: control target
= control target key end

     0   :  { %9 = vsyncpa [#allocation3], 0  ;;  %s1737_s0 = inlined_call_operand.hbm [shape: f32[300,128], index: 0, kind: input, shape index: {}]   ;;  %s1738_s1 = inlined_call_operand.hbm [shape: f32[128,128], index: 1, kind: input, shape index: {}]   ;;  %s1739_s2 = inlined_call_operand.hbm [shape: f32[128,128], index: 2, kind: input, shape index: {}]   ;;  %s1740_s3 = inlined_call_operand.vmem [shape: f32[1,128], index: 3, kind: input, shape index: {}]   ;;  %s1741_s4 = inlined_call_operand.hbm [shape: f32[300,128], index: 4, kind: output, shape index: {}]  }
   0x1   :  { %11 = vsyncpa [#allocation3 + $0x1], 0 }
   0x2   :  { %12 = vsyncpa [#allocation6], 0 }
   0x3   :  { %13 = vsyncpa [#allocation4], 0 }
   0x4   :  { %15 = vsyncpa [#allocation4 + $0x1], 0  ;;  %s1331_s15 = smov 0   ;;  %s1333_s16 = smov 0  }
   0x5   :  { %s1335_s17 = smov 0   ;;  %s1337_s18 = smov 0  }
   0x6 LB: > { %s1352_s19 = sadd.s32 4294967295, %s1293_s18   ;;  %s750_s20 = sadd.s32 4294967294, %s1293_s18   ;;  %s1293_s18 = sphi %s1337_s18, %s1761_s18   ;;  %s1289_s17 = sphi %s1335_s17, %s1760_s17   ;;  %s1285_s16 = sphi %s1333_s16, %s1759_s16   ;;  %s1281_s15 = sphi %s1331_s15, %s1758_s15  }
   0x7   : > { %p41_p0 = scmp.ne.s32.totalorder %s1285_s16, %s1281_s15  ;;  %p1742_p1 = scmp.eq.s32.totalorder %s1352_s19, 0 }
   0x8   : > { %p134_p3 = scmp.eq.s32.totalorder %s750_s20, 1  ;;  %p751_p5 = scmp.ge.s32.totalorder %s1293_s18, 1 }
   0x9   : > { %p1361_p4 = por %p1742_p1, %p41_p0  ;;  %p141_p7 = scmp.lt.s32.totalorder %s1293_s18, 3 }
   0xa   : > { %p1366_p6 = por %p134_p3, %p41_p0  ;;  %s1295_s24 = smov [#allocation5]  }
   0xb   : > { %s1745_s21 = scalar_select %p1361_p4, 1, 0 }
   0xc   : > { %s1746_s22 = scalar_select %p1366_p6, 1, 0 }
   0xd   : > { %p1371_p8 = pnand %p751_p5, %p141_p7  ;;  %s153_s25 = sshll.u32 %s1295_s24, 4  ;;  %s1375_s25 = int_to_ptr.vmem [resolvable:$true] %s153_s25 }
   0xe   : > { %s1296_s27 = smov [#allocation7]   ;;  %s1137_s5 = scalar_lea.hbm %s1738_s1, 2048 }
   0xf   : > { %p1075_p9 = pneg %p1371_p8  ;;  %s166_s28 = sshll.u32 %s1296_s27, 4  ;;  %s1386_s28 = int_to_ptr.vmem [resolvable:$true] %s166_s28 }
  0x10   : > { %p1138_p12 = scmp.ne.s32.totalorder %s1738_s1, %s1137_s5  ;;  %p1144_p5 = scmp.lt.u32.totalorder %s1137_s5, %s1738_s1 }
  0x11   : > { %p1382_p11 = pnand %p1075_p9, %p1742_p1 }
  0x13   : > { %p1139_p13 = pneg %p1382_p11 }
  0x15   : > { %p1140_p0 = pnand %p1139_p13, %p1138_p12 }
  0x17   : > { %p1141_p3 = pneg %p1140_p0 }
  0x19   : > { %p1146_p7 = pnand %p1144_p5, %p1141_p3 }
  0x1b   : > { %1149 = shalt.err (!%p1146_p7)
}
  0x1c   : > { %s1150_s10 = scalar_lea.vmem %s1375_s25, 2048  ;;  %p1158_p2 = scmp.lt.s32.totalorder %s1375_s25, %s1375_s25 }
  0x1d   : > { %p1151_p9 = scmp.ne.s32.totalorder %s1375_s25, %s1150_s10  ;;  %p1159_p12 = scmp.lt.s32.totalorder %s1150_s10, %s1150_s10 }
  0x1f   : > { %p1153_p10 = pnand %p1151_p9, %p1139_p13  ;;  %p1160_p0 = por %p1159_p12, %p1158_p2 }
  0x21   : > { %p1154_p1 = pneg %p1153_p10 }
  0x23   : > { %p1161_p6 = pnand %p1160_p0, %p1154_p1 }
  0x25   : > { %1164 = shalt.err (!%p1161_p6)
}
  0x26   : > { %s1297_s11 = smov 128   ;;  %s1298_s12 = smov 8  }
  0x27   : > { %1078 = dma.hbm_to_vmem [thread:$0]  (!%p1382_p11), %s1738_s1, 2048, %s1375_s25, [#allocation6], %s1297_s11, %s1297_s11, %s1298_s12  }
  0x28   : > { %s1165_s27 = scalar_lea.hbm %s1739_s2, 2048 }
  0x29   : > { %p1166_p1 = scmp.ne.s32.totalorder %s1739_s2, %s1165_s27  ;;  %p1172_p10 = scmp.lt.u32.totalorder %s1165_s27, %s1739_s2 }
  0x2b   : > { %p1168_p2 = pnand %p1166_p1, %p1139_p13 }
  0x2d   : > { %p1169_p6 = pneg %p1168_p2 }
  0x2f   : > { %p1174_p3 = pnand %p1172_p10, %p1169_p6 }
  0x31   : > { %1177 = shalt.err (!%p1174_p3)
}
  0x32   : > { %s1178_s25 = scalar_lea.vmem %s1386_s28, 2048  ;;  %p1186_p12 = scmp.lt.s32.totalorder %s1386_s28, %s1386_s28 }
  0x33   : > { %p1179_p5 = scmp.ne.s32.totalorder %s1386_s28, %s1178_s25  ;;  %p1187_p0 = scmp.lt.s32.totalorder %s1178_s25, %s1178_s25 }
  0x35   : > { %p1181_p7 = pnand %p1179_p5, %p1139_p13  ;;  %p1188_p1 = por %p1187_p0, %p1186_p12 }
  0x37   : > { %p1182_p9 = pneg %p1181_p7 }
  0x39   : > { %p1189_p2 = pnand %p1188_p1, %p1182_p9 }
  0x3b   : > { %1192 = shalt.err (!%p1189_p2)
}
  0x3c   : > { %1081 = dma.hbm_to_vmem [thread:$0]  (!%p1382_p11), %s1739_s2, 2048, %s1386_s28, [#allocation6], %s1297_s11, %s1297_s11, %s1298_s12  }
  0x3d   : > { %s1447_s26 = sadd.s32 1, %s1293_s18   ;;  %s28_s9 = sadd.s32 1, %s1289_s17 }
  0x3e   : > { %s25_s10 = ssub.s32 %s1293_s18, %s1447_s26  ;;  %p35_p13 = scmp.ne.s32.totalorder %s1289_s17, %s1285_s16 }
  0x3f   : > { %p26_p6 = scmp.eq.s32.totalorder %s25_s10, 0  ;;  %p36_p10 = scmp.eq.s32.totalorder %s1293_s18, 0 }
  0x40   : > { %p1749_p3 = scmp.eq.s32.totalorder %s1352_s19, 1  ;;  %p1092_p7 = scmp.lt.s32.totalorder %s1293_s18, 2 }
  0x41   : > { %s1463_s14 = scalar_select %p26_p6, %s1289_s17, %s28_s9  }
  0x42   : > { %p1457_p5 = por %p1749_p3, %p35_p13  ;;  %p37_p9 = por %p36_p10, %p35_p13 }
  0x43   : > { %s183_s20 = sand.u32 1, %s1289_s17   ;;  %s763_s28 = smul.u32 2432, %s1293_s18 }
  0x44   : > { %s1750_s13 = scalar_select %p1457_p5, 1, 0 }
  0x45   : > { %s1061_s24 = smul.u32 152, %s183_s20  ;;  %p1467_p11 = pnand %p1092_p7, %p37_p9 }
  0x46   : > { %s1474_s5 = scalar_lea.hbm %s1737_s0, %s763_s28  ;;  %s1478_s7 = scalar_lea.sflag [#allocation3], %s183_s20 }
  0x47   : > { %s187_s6 = scalar_lea.vmem [#allocation2], %s1061_s24  ;;  %s1193_s8 = scalar_lea.hbm %s1474_s5, 2432 }
  0x48   : > { %s194_s25 = sshll.u32 %s187_s6, 4  ;;  %p1194_p12 = scmp.ne.s32.totalorder %s1474_s5, %s1193_s8  ;;  %s1476_s25 = int_to_ptr.vmem [resolvable:$true] %s194_s25 }
  0x49   : > { %p1195_p0 = pneg %p1467_p11  ;;  %s1198_s28 = scalar_lea.hbm %s1737_s0, 4864 }
  0x4a   : > { %p1199_p13 = scmp.lt.u32.totalorder %s1474_s5, %s1737_s0  ;;  %p1200_p6 = scmp.lt.u32.totalorder %s1198_s28, %s1193_s8 }
  0x4b   : > { %p1196_p1 = pnand %p1195_p0, %p1194_p12  ;;  %p1202_p3 = scmp.lt.u32.totalorder %s1193_s8, %s1474_s5 }
  0x4c   : > { %p1201_p10 = por %p1200_p6, %p1199_p13 }
  0x4d   : > { %p1197_p2 = pneg %p1196_p1 }
  0x4e   : > { %p1203_p7 = por %p1202_p3, %p1201_p10 }
  0x50   : > { %p1204_p9 = pnand %p1203_p7, %p1197_p2 }
  0x52   : > { %1207 = shalt.err (!%p1204_p9)
}
  0x53   : > { %s1208_s20 = scalar_lea.vmem %s1476_s25, 2432  ;;  %s1299_s24 = smov [#allocation2]  }
  0x54   : > { %p1209_p12 = scmp.ne.s32.totalorder %s1476_s25, %s1208_s20  ;;  %s1213_s6 = sshll.u32 %s1299_s24, 4  ;;  %s1214_s6 = int_to_ptr.vmem [resolvable:$false] %s1213_s6 }
  0x55   : > { %s1215_s9 = scalar_lea.vmem %s1214_s6, 4864  ;;  %p1216_p4 = scmp.lt.s32.totalorder %s1476_s25, %s1214_s6 }
  0x56   : > { %p1211_p1 = pnand %p1209_p12, %p1195_p0  ;;  %p1217_p13 = scmp.lt.s32.totalorder %s1215_s9, %s1208_s20 }
  0x58   : > { %p1212_p5 = pneg %p1211_p1  ;;  %p1218_p6 = por %p1217_p13, %p1216_p4 }
  0x5a   : > { %p1219_p10 = pnand %p1218_p6, %p1212_p5 }
  0x5c   : > { %1222 = shalt.err (!%p1219_p10)
}
  0x5d   : > { %1085 = dma.hbm_to_vmem [thread:$0]  (!%p1467_p11), %s1474_s5, 2432, %s1476_s25, %s1478_s7, %s1297_s11, %s1297_s11, %s1298_s12  }
  0x5e   : > { %206 = sbr.rel (%p1371_p8) target bundleno = 652 (0x28c), region = 36  ;;  %s1512_s8 = sand.u32 (!%p1371_p8), 1, %s1285_s16  }
  0x5f   : > { %s1062_s10 = smul.u32 (!%p1371_p8), 152, %s1512_s8  ;;  %s209_s28 = scalar_lea.sflag (!%p1371_p8), [#allocation3], %s1512_s8 }
  0x60   : > { %p1752_p4 = scmp.ne.s32.totalorder (!%p1371_p8), %s1745_s21, 0 }
  0x61   : > { %s1518_s27 = scalar_lea.vmem (!%p1371_p8), [#allocation2], %s1062_s10 }
  0x65   : > { %1268 = dma.done.wait (%p1752_p4), %s209_s28, 2432  }
  0x66   : > { %1270 = vsyncadd (%p1752_p4), %s209_s28, 4294964864  ;;  %p1753_p5 = scmp.eq.s32.totalorder %s1352_s19, 0 }
  0x68   : > { %1272 = dma.done.wait (%p1753_p5), [#allocation6], 4096   ;;  %p1754_p8 = pmov %p1753_p5 }
  0x69   : > { %v1300_v0 = vmov 0.0|0.0   ;;  %vm1301_vm0 = vmmov 0   ;;  %v1302_v1 = vmov 0.0   ;;  %v266_v2 = vld [vmem:[#allocation5] sm:$0xff]  ;;  %v267_v3 = vld [vmem:[#allocation5 + $0x8] sm:$0xff]  ;;  %v268_v4 = vld [vmem:[#allocation5 + $0x10] sm:$0xff] }
  0x6a   : > { %1274 = vsyncadd (%p1754_p8), [#allocation6], 4294963200  ;;  %1013 = vmatprep.subr.bf16.mxu0 %v1300_v0  ;;  %867 = vmatprep.mubr.msk.f32.mxu0 %vm1301_vm0, %v1302_v1  ;;  %v1014_v5 = vpack.c.bf16 %v267_v3, %v266_v2  ;;  %v269_v6 = vld [vmem:[#allocation5 + $0x18] sm:$0xff]  ;;  %v270_v8 = vld [vmem:[#allocation5 + $0x20] sm:$0xff]  ;;  %s1647_s11 = scalar_lea.vmem [#allocation8], %s1062_s10  ;;  %s764_s12 = smul.u32 2432, %s1352_s19 }
  0x6b   : > { %1037 = vmatprep.subr.bf16.mxu1 %v1300_v0  ;;  %956 = vmatprep.mubr.msk.f32.mxu1 %vm1301_vm0, %v1302_v1  ;;  %v1017_v7 = vpack.c.bf16 %v269_v6, %v268_v4  ;;  %v271_v9 = vld [vmem:[#allocation5 + $0x28] sm:$0xff]  ;;  %v272_v11 = vld [vmem:[#allocation5 + $0x30] sm:$0xff]  ;;  %v273_v12 = vld [vmem:[#allocation5 + $0x38] sm:$0xff]  ;;  %s658_s5 = sshll.u32 %s1647_s11, 4  ;;  %s645_s19 = scalar_lea.sflag [#allocation4], %s1512_s8  ;;  %s1691_s5 = int_to_ptr.vmem [resolvable:$true] %s658_s5 }
  0x6c   : > { %1015 = vmatpush3.bf16.msra.mxu0 %v1014_v5  ;;  %v1020_v10 = vpack.c.bf16 %v271_v9, %v270_v8  ;;  %v1023_v13 = vpack.c.bf16 %v273_v12, %v272_v11  ;;  %v274_v14 = vld [vmem:[#allocation5 + $0x40] sm:$0xff]  ;;  %v275_v15 = vld [vmem:[#allocation5 + $0x48] sm:$0xff]  ;;  %v444_v18 = vld [vmem:[#allocation7 + $0x10] sm:$0xff]  ;;  %s1689_s29 = scalar_lea.hbm %s1741_s4, %s764_s12  ;;  %s1223_s30 = scalar_lea.vmem %s1691_s5, 2432 }
  0x6d   : > { %1016 = vmatprep.subr.bf16.mxu0 %v1300_v0  ;;  %v442_v16 = vld [vmem:[#allocation7] sm:$0xff]  ;;  %v443_v17 = vld [vmem:[#allocation7 + $0x8] sm:$0xff]  ;;  %v445_v19 = vld [vmem:[#allocation7 + $0x18] sm:$0xff]  ;;  %v1026_v21 = vpack.c.bf16 %v275_v15, %v274_v14  ;;  %p1224_p11 = scmp.ne.s32.totalorder %s1691_s5, %s1223_s30  ;;  %p1755_p0 = scmp.ne.s32.totalorder %s1750_s13, 0 }
  0x6e   : > { %v1038_v20 = vpack.c.bf16 %v443_v17, %v442_v16  ;;  %v276_v22 = vld [vmem:[#allocation5 + $0x50] sm:$0xff]  ;;  %v1041_v23 = vpack.c.bf16 %v445_v19, %v444_v18  ;;  %v277_v24 = vld [vmem:[#allocation5 + $0x58] sm:$0xff]  ;;  %v446_v25 = vld [vmem:[#allocation7 + $0x20] sm:$0xff]  ;;  %s1303_s20 = smov [#allocation8]  }
  0x6f   : > { %v447_v26 = vld [vmem:[#allocation7 + $0x28] sm:$0xff]  ;;  %v1029_v27 = vpack.c.bf16 %v277_v24, %v276_v22  ;;  %v278_v28 = vld [vmem:[#allocation5 + $0x60] sm:$0xff]  ;;  %v448_v31 = vld [vmem:[#allocation7 + $0x30] sm:$0xff]  ;;  %p1225_p2 = pnand %p1224_p11, %p1755_p0  ;;  %s1227_s24 = sshll.u32 %s1303_s20, 4  ;;  %s1228_s24 = int_to_ptr.vmem [resolvable:$false] %s1227_s24 }
  0x70   : > { %1018 = vmatpush3.bf16.msra.mxu0 %v1017_v7  ;;  %1039 = vmatpush3.bf16.msra.mxu1 %v1038_v20  ;;  %v1044_v29 = vpack.c.bf16 %v447_v26, %v446_v25  ;;  %v279_v30 = vld [vmem:[#allocation5 + $0x68] sm:$0xff]  ;;  %v449_v32 = vld [vmem:[#allocation7 + $0x38] sm:$0xff]  ;;  %v280_v34 = vld [vmem:[#allocation5 + $0x70] sm:$0xff]  ;;  %s1229_s6 = scalar_lea.vmem %s1228_s24, 4864  ;;  %p1230_p7 = scmp.lt.s32.totalorder %s1691_s5, %s1228_s24 }
  0x71   : > { %1019 = vmatprep.subr.bf16.mxu0 %v1300_v0  ;;  %1040 = vmatprep.subr.bf16.mxu1 %v1300_v0  ;;  %v1032_v33 = vpack.c.bf16 %v279_v30, %v278_v28  ;;  %v1047_v35 = vpack.c.bf16 %v449_v32, %v448_v31  ;;  %v281_v36 = vld [vmem:[#allocation5 + $0x78] sm:$0xff]  ;;  %v450_v37 = vld [vmem:[#allocation7 + $0x40] sm:$0xff]  ;;  %v451_v38 = vld [vmem:[#allocation7 + $0x48] sm:$0xff]  ;;  %p1226_p3 = pneg %p1225_p2  ;;  %p1231_p9 = scmp.lt.s32.totalorder %s1229_s6, %s1223_s30 }
  0x72   : > { %v1035_v39 = vpack.c.bf16 %v281_v36, %v280_v34  ;;  %v1050_v40 = vpack.c.bf16 %v451_v38, %v450_v37  ;;  %v452_v41 = vld [vmem:[#allocation7 + $0x50] sm:$0xff]  ;;  %v453_v42 = vld [vmem:[#allocation7 + $0x58] sm:$0xff]  ;;  %v454_v45 = vld [vmem:[#allocation7 + $0x60] sm:$0xff] }
  0x73   : > { %v247_v43 = vld [vmem:[%s1518_s27] sm:$0xff]  ;;  %v1053_v44 = vpack.c.bf16 %v453_v42, %v452_v41  ;;  %v248_v47 = vld [vmem:[%s1518_s27 + $0x8] sm:$0xff]  ;;  %v249_v51 = vld [vmem:[%s1518_s27 + $0x10] sm:$0xff]  ;;  %p1232_p12 = por %p1231_p9, %p1230_p7 }
  0x74   : > { %1021 = vmatpush3.bf16.msra.mxu0 %v1020_v10  ;;  %1042 = vmatpush3.bf16.msra.mxu1 %v1041_v23  ;;  %v455_v46 = vld [vmem:[#allocation7 + $0x68] sm:$0xff]  ;;  %v456_v49 = vld [vmem:[#allocation7 + $0x70] sm:$0xff]  ;;  %v457_v50 = vld [vmem:[#allocation7 + $0x78] sm:$0xff] }
  0x75   : > { %1022 = vmatprep.subr.bf16.mxu0 %v1300_v0  ;;  %1043 = vmatprep.subr.bf16.mxu1 %v1300_v0  ;;  %v1056_v48 = vpack.c.bf16 %v455_v46, %v454_v45  ;;  %v1059_v52 = vpack.c.bf16 %v457_v50, %v456_v49  ;;  %v250_v53 = vld [vmem:[%s1518_s27 + $0x18] sm:$0xff]  ;;  %v251_v54 = vld [vmem:[%s1518_s27 + $0x20] sm:$0xff]  ;;  %v252_v55 = vld [vmem:[%s1518_s27 + $0x28] sm:$0xff]  ;;  %p1233_p1 = pnand %p1232_p12, %p1226_p3 }
  0x76   : > { %v253_v56 = vld [vmem:[%s1518_s27 + $0x30] sm:$0xff]  ;;  %v254_v57 = vld [vmem:[%s1518_s27 + $0x38] sm:$0xff]  ;;  %v255_v58 = vld [vmem:[%s1518_s27 + $0x40] sm:$0xff] }
  0x77   : > { %v256_v59 = vld [vmem:[%s1518_s27 + $0x48] sm:$0xff]  ;;  %v257_v60 = vld [vmem:[%s1518_s27 + $0x50] sm:$0xff]  ;;  %v258_v61 = vld [vmem:[%s1518_s27 + $0x58] sm:$0xff] }
  0x78   : > { %1024 = vmatpush3.bf16.msra.mxu0 %v1023_v13  ;;  %1045 = vmatpush3.bf16.msra.mxu1 %v1044_v29  ;;  %v259_v62 = vld [vmem:[%s1518_s27 + $0x60] sm:$0xff]  ;;  %v260_v63 = vld [vmem:[%s1518_s27 + $0x68] sm:$0xff]  ;;  %v262_v2 = vld [vmem:[%s1518_s27 + $0x78] sm:$0xff] }
  0x79   : > { %1025 = vmatprep.subr.bf16.mxu0 %v1300_v0  ;;  %1046 = vmatprep.subr.bf16.mxu1 %v1300_v0  ;;  %v263_v3 = vld [vmem:[%s1518_s27 + $0x80] sm:$0xff]  ;;  %v264_v4 = vld [vmem:[%s1518_s27 + $0x88] sm:$0xff]  ;;  %v265_v5 = vld [vmem:[%s1518_s27 + $0x90] sm:$0xff] }
  0x7c   : > { %1027 = vmatpush3.bf16.msra.mxu0 %v1026_v21  ;;  %1048 = vmatpush3.bf16.msra.mxu1 %v1047_v35 }
  0x7d   : > { %1028 = vmatprep.subr.bf16.mxu0 %v1300_v0  ;;  %1049 = vmatprep.subr.bf16.mxu1 %v1300_v0 }
  0x80   : > { %1030 = vmatpush3.bf16.msra.mxu0 %v1029_v27  ;;  %1051 = vmatpush3.bf16.msra.mxu1 %v1050_v40 }
  0x81   : > { %1031 = vmatprep.subr.bf16.mxu0 %v1300_v0  ;;  %1052 = vmatprep.subr.bf16.mxu1 %v1300_v0 }
  0x84   : > { %1033 = vmatpush3.bf16.msra.mxu0 %v1032_v33  ;;  %1054 = vmatpush3.bf16.msra.mxu1 %v1053_v44  ;;  %v1642_v44 = vld [vmem:[%s1740_s3] ss:$0 sm:$0xff] }
  0x85   : > { %1034 = vmatprep.subr.bf16.mxu0 %v1300_v0  ;;  %1055 = vmatprep.subr.bf16.mxu1 %v1300_v0 }
  0x88   : > { %1036 = vmatpush3.bf16.msra.mxu0 %v1035_v39  ;;  %1057 = vmatpush3.bf16.msra.mxu1 %v1056_v48 }
  0x89   : > { %1058 = vmatprep.subr.bf16.mxu1 %v1300_v0  ;;  %v261_v0 = vld [vmem:[%s1518_s27 + $0x70] sm:$0xff] }
  0x8b   : > { %868 = vmatmul.mubr.f32.vlgmr.msra.gmra.mrb[0].mxu0 %v247_v43 }
  0x8c   : > { %870 = vmatprep.mubr.msk.f32.mxu0 %vm1301_vm0, %v1302_v1  ;;  %1060 = vmatpush3.bf16.msra.mxu1 %v1059_v52 }
  0x8f   : > { %871 = vmatmul.mubr.f32.gmra.mrb[2].mxu0 %v248_v47 }
  0x90   : > { %873 = vmatprep.mubr.msk.f32.mxu0 %vm1301_vm0, %v1302_v1 }
  0x93   : > { %874 = vmatmul.mubr.f32.gmra.mrb[4].mxu0 %v249_v51 }
  0x94   : > { %876 = vmatprep.mubr.msk.f32.mxu0 %vm1301_vm0, %v1302_v1 }
  0x97   : > { %877 = vmatmul.mubr.f32.gmra.mrb[6].mxu0 %v250_v53 }
  0x98   : > { %879 = vmatprep.mubr.msk.f32.mxu0 %vm1301_vm0, %v1302_v1 }
  0x9b   : > { %880 = vmatmul.mubr.f32.gmra.mrb[8].mxu0 %v251_v54 }
  0x9c   : > { %882 = vmatprep.mubr.msk.f32.mxu0 %vm1301_vm0, %v1302_v1 }
  0x9f   : > { %883 = vmatmul.mubr.f32.gmra.mrb[10].mxu0 %v252_v55 }
  0xa0   : > { %885 = vmatprep.mubr.msk.f32.mxu0 %vm1301_vm0, %v1302_v1 }
  0xa3   : > { %886 = vmatmul.mubr.f32.gmra.mrb[12].mxu0 %v253_v56 }
  0xa4   : > { %888 = vmatprep.mubr.msk.f32.mxu0 %vm1301_vm0, %v1302_v1 }
  0xa7   : > { %889 = vmatmul.mubr.f32.gmra.mrb[14].mxu0 %v254_v57 }
  0xa8   : > { %891 = vmatprep.mubr.msk.f32.mxu0 %vm1301_vm0, %v1302_v1 }
  0xab   : > { %892 = vmatmul.mubr.f32.gmra.mrb[16].mxu0 %v255_v58 }
  0xac   : > { %894 = vmatprep.mubr.msk.f32.mxu0 %vm1301_vm0, %v1302_v1 }
  0xaf   : > { %895 = vmatmul.mubr.f32.gmra.mrb[18].mxu0 %v256_v59 }
  0xb0   : > { %897 = vmatprep.mubr.msk.f32.mxu0 %vm1301_vm0, %v1302_v1 }
  0xb3   : > { %898 = vmatmul.mubr.f32.gmra.mrb[20].mxu0 %v257_v60 }
  0xb4   : > { %900 = vmatprep.mubr.msk.f32.mxu0 %vm1301_vm0, %v1302_v1 }
  0xb7   : > { %901 = vmatmul.mubr.f32.gmra.mrb[22].mxu0 %v258_v61 }
  0xb8   : > { %903 = vmatprep.mubr.msk.f32.mxu0 %vm1301_vm0, %v1302_v1 }
  0xbb   : > { %904 = vmatmul.mubr.f32.gmra.mrb[24].mxu0 %v259_v62 }
  0xbc   : > { %906 = vmatprep.mubr.msk.f32.mxu0 %vm1301_vm0, %v1302_v1 }
  0xbf   : > { %907 = vmatmul.mubr.f32.gmra.mrb[26].mxu0 %v260_v63 }
  0xc0   : > { %909 = vmatprep.mubr.msk.f32.mxu0 %vm1301_vm0, %v1302_v1 }
  0xc3   : > { %910 = vmatmul.mubr.f32.gmra.mrb[28].mxu0 %v261_v0 }
  0xc4   : > { %912 = vmatprep.mubr.msk.f32.mxu0 %vm1301_vm0, %v1302_v1 }
  0xc7   : > { %913 = vmatmul.mubr.f32.gmra.mrb[30].mxu0 %v262_v2 }
  0xc8   : > { %915 = vmatprep.mubr.msk.f32.mxu0 %vm1301_vm0, %v1302_v1 }
  0xcb   : > { %916 = vmatmul.mubr.f32.gmra.mrb[32].mxu0 %v263_v3 }
  0xcc   : > { %918 = vmatprep.mubr.msk.f32.mxu0 %vm1301_vm0, %v1302_v1 }
  0xcf   : > { %919 = vmatmul.mubr.f32.gmra.mrb[34].mxu0 %v264_v4 }
  0xd0   : > { %921 = vmatprep.mubr.msk.f32.mxu0 %vm1301_vm0, %v1302_v1 }
  0xd3   : > { %922 = vmatmul.mubr.f32.gmra.mrb[36].mxu0 %v265_v5 }
 0x15e   : > { %v348_v6 = vpop.f32.mrb[0].mxu0 }
 0x15f   : > { %v869_v7 = vpop.f32.mrb[1].mxu0  ;;  %957 = vmatmul.mubr.f32.vlgmr.msra.gmra.mrb[0].mxu1 %v348_v6 }
 0x160   : > { %959 = vmatprep.mubr.msk.f32.mxu1 %vm1301_vm0, %v1302_v1 }
 0x162   : > { %v353_v8 = vpop.f32.mrb[2].mxu0 }
 0x163   : > { %v872_v9 = vpop.f32.mrb[3].mxu0  ;;  %960 = vmatmul.mubr.f32.gmra.mrb[2].mxu1 %v353_v8 }
 0x164   : > { %962 = vmatprep.mubr.msk.f32.mxu1 %vm1301_vm0, %v1302_v1 }
 0x166   : > { %v358_v10 = vpop.f32.mrb[4].mxu0 }
 0x167   : > { %v875_v11 = vpop.f32.mrb[5].mxu0  ;;  %963 = vmatmul.mubr.f32.gmra.mrb[4].mxu1 %v358_v10 }
 0x168   : > { %965 = vmatprep.mubr.msk.f32.mxu1 %vm1301_vm0, %v1302_v1 }
 0x16a   : > { %v363_v12 = vpop.f32.mrb[6].mxu0 }
 0x16b   : > { %v878_v13 = vpop.f32.mrb[7].mxu0  ;;  %966 = vmatmul.mubr.f32.gmra.mrb[6].mxu1 %v363_v12 }
 0x16c   : > { %968 = vmatprep.mubr.msk.f32.mxu1 %vm1301_vm0, %v1302_v1 }
 0x16e   : > { %v368_v14 = vpop.f32.mrb[8].mxu0 }
 0x16f   : > { %v881_v15 = vpop.f32.mrb[9].mxu0  ;;  %969 = vmatmul.mubr.f32.gmra.mrb[8].mxu1 %v368_v14 }
 0x170   : > { %971 = vmatprep.mubr.msk.f32.mxu1 %vm1301_vm0, %v1302_v1 }
 0x172   : > { %v373_v16 = vpop.f32.mrb[10].mxu0 }
 0x173   : > { %v884_v17 = vpop.f32.mrb[11].mxu0  ;;  %972 = vmatmul.mubr.f32.gmra.mrb[10].mxu1 %v373_v16 }
 0x174   : > { %974 = vmatprep.mubr.msk.f32.mxu1 %vm1301_vm0, %v1302_v1 }
 0x176   : > { %v378_v18 = vpop.f32.mrb[12].mxu0 }
 0x177   : > { %v887_v19 = vpop.f32.mrb[13].mxu0  ;;  %975 = vmatmul.mubr.f32.gmra.mrb[12].mxu1 %v378_v18 }
 0x178   : > { %977 = vmatprep.mubr.msk.f32.mxu1 %vm1301_vm0, %v1302_v1 }
 0x17a   : > { %v383_v20 = vpop.f32.mrb[14].mxu0 }
 0x17b   : > { %v890_v21 = vpop.f32.mrb[15].mxu0  ;;  %978 = vmatmul.mubr.f32.gmra.mrb[14].mxu1 %v383_v20 }
 0x17c   : > { %980 = vmatprep.mubr.msk.f32.mxu1 %vm1301_vm0, %v1302_v1 }
 0x17e   : > { %v388_v22 = vpop.f32.mrb[16].mxu0 }
 0x17f   : > { %v893_v23 = vpop.f32.mrb[17].mxu0  ;;  %981 = vmatmul.mubr.f32.gmra.mrb[16].mxu1 %v388_v22 }
 0x180   : > { %983 = vmatprep.mubr.msk.f32.mxu1 %vm1301_vm0, %v1302_v1 }
 0x182   : > { %v393_v24 = vpop.f32.mrb[18].mxu0 }
 0x183   : > { %v896_v25 = vpop.f32.mrb[19].mxu0  ;;  %984 = vmatmul.mubr.f32.gmra.mrb[18].mxu1 %v393_v24 }
 0x184   : > { %986 = vmatprep.mubr.msk.f32.mxu1 %vm1301_vm0, %v1302_v1 }
 0x186   : > { %v398_v26 = vpop.f32.mrb[20].mxu0 }
 0x187   : > { %v899_v27 = vpop.f32.mrb[21].mxu0  ;;  %987 = vmatmul.mubr.f32.gmra.mrb[20].mxu1 %v398_v26 }
 0x188   : > { %989 = vmatprep.mubr.msk.f32.mxu1 %vm1301_vm0, %v1302_v1 }
 0x18a   : > { %v403_v28 = vpop.f32.mrb[22].mxu0 }
 0x18b   : > { %v902_v29 = vpop.f32.mrb[23].mxu0  ;;  %990 = vmatmul.mubr.f32.gmra.mrb[22].mxu1 %v403_v28 }
 0x18c   : > { %992 = vmatprep.mubr.msk.f32.mxu1 %vm1301_vm0, %v1302_v1 }
 0x18e   : > { %v408_v30 = vpop.f32.mrb[24].mxu0 }
 0x18f   : > { %v905_v31 = vpop.f32.mrb[25].mxu0  ;;  %993 = vmatmul.mubr.f32.gmra.mrb[24].mxu1 %v408_v30 }
 0x190   : > { %995 = vmatprep.mubr.msk.f32.mxu1 %vm1301_vm0, %v1302_v1 }
 0x192   : > { %v413_v32 = vpop.f32.mrb[26].mxu0 }
 0x193   : > { %v908_v33 = vpop.f32.mrb[27].mxu0  ;;  %996 = vmatmul.mubr.f32.gmra.mrb[26].mxu1 %v413_v32 }
 0x194   : > { %998 = vmatprep.mubr.msk.f32.mxu1 %vm1301_vm0, %v1302_v1 }
 0x196   : > { %v418_v34 = vpop.f32.mrb[28].mxu0 }
 0x197   : > { %v911_v35 = vpop.f32.mrb[29].mxu0  ;;  %999 = vmatmul.mubr.f32.gmra.mrb[28].mxu1 %v418_v34 }
 0x198   : > { %1001 = vmatprep.mubr.msk.f32.mxu1 %vm1301_vm0, %v1302_v1 }
 0x19a   : > { %v423_v36 = vpop.f32.mrb[30].mxu0 }
 0x19b   : > { %v914_v37 = vpop.f32.mrb[31].mxu0  ;;  %1002 = vmatmul.mubr.f32.gmra.mrb[30].mxu1 %v423_v36 }
 0x19c   : > { %1004 = vmatprep.mubr.msk.f32.mxu1 %vm1301_vm0, %v1302_v1 }
 0x19e   : > { %v428_v38 = vpop.f32.mrb[32].mxu0 }
 0x19f   : > { %v917_v39 = vpop.f32.mrb[33].mxu0  ;;  %1005 = vmatmul.mubr.f32.gmra.mrb[32].mxu1 %v428_v38 }
 0x1a0   : > { %1007 = vmatprep.mubr.msk.f32.mxu1 %vm1301_vm0, %v1302_v1 }
 0x1a2   : > { %v433_v40 = vpop.f32.mrb[34].mxu0 }
 0x1a3   : > { %v920_v41 = vpop.f32.mrb[35].mxu0  ;;  %1008 = vmatmul.mubr.f32.gmra.mrb[34].mxu1 %v433_v40 }
 0x1a4   : > { %1010 = vmatprep.mubr.msk.f32.mxu1 %vm1301_vm0, %v1302_v1 }
 0x1a6   : > { %v438_v42 = vpop.f32.mrb[36].mxu0 }
 0x1a7   : > { %v923_v43 = vpop.f32.mrb[37].mxu0  ;;  %1011 = vmatmul.mubr.f32.gmra.mrb[36].mxu1 %v438_v42 }
 0x232   : > { %v531_v45 = vpop.f32.mrb[0].mxu1 }
 0x233   : > { %v532_v46 = vadd.f32 %v1642_v44, %v531_v45  ;;  %v958_v47 = vpop.f32.mrb[1].mxu1 }
 0x235   : > { %625 = vst [vmem:[%s1647_s11] sm:$0xff] %v532_v46 }
 0x236   : > { %v536_v1 = vpop.f32.mrb[2].mxu1 }
 0x237   : > { %v537_v48 = vadd.f32 %v1642_v44, %v536_v1  ;;  %v961_v49 = vpop.f32.mrb[3].mxu1 }
 0x239   : > { %626 = vst [vmem:[%s1647_s11 + $0x8] sm:$0xff] %v537_v48 }
 0x23a   : > { %v541_v50 = vpop.f32.mrb[4].mxu1 }
 0x23b   : > { %v542_v51 = vadd.f32 %v1642_v44, %v541_v50  ;;  %v964_v52 = vpop.f32.mrb[5].mxu1 }
 0x23d   : > { %627 = vst [vmem:[%s1647_s11 + $0x10] sm:$0xff] %v542_v51 }
 0x23e   : > { %v546_v53 = vpop.f32.mrb[6].mxu1 }
 0x23f   : > { %v547_v54 = vadd.f32 %v1642_v44, %v546_v53  ;;  %v967_v55 = vpop.f32.mrb[7].mxu1 }
 0x241   : > { %628 = vst [vmem:[%s1647_s11 + $0x18] sm:$0xff] %v547_v54 }
 0x242   : > { %v551_v56 = vpop.f32.mrb[8].mxu1 }
 0x243   : > { %v552_v57 = vadd.f32 %v1642_v44, %v551_v56  ;;  %v970_v58 = vpop.f32.mrb[9].mxu1 }
 0x245   : > { %629 = vst [vmem:[%s1647_s11 + $0x20] sm:$0xff] %v552_v57 }
 0x246   : > { %v556_v59 = vpop.f32.mrb[10].mxu1 }
 0x247   : > { %v557_v60 = vadd.f32 %v1642_v44, %v556_v59  ;;  %v973_v61 = vpop.f32.mrb[11].mxu1 }
 0x249   : > { %630 = vst [vmem:[%s1647_s11 + $0x28] sm:$0xff] %v557_v60 }
 0x24a   : > { %v561_v62 = vpop.f32.mrb[12].mxu1 }
 0x24b   : > { %v562_v63 = vadd.f32 %v1642_v44, %v561_v62  ;;  %v976_v0 = vpop.f32.mrb[13].mxu1 }
 0x24d   : > { %631 = vst [vmem:[%s1647_s11 + $0x30] sm:$0xff] %v562_v63 }
 0x24e   : > { %v566_v2 = vpop.f32.mrb[14].mxu1 }
 0x24f   : > { %v567_v3 = vadd.f32 %v1642_v44, %v566_v2  ;;  %v979_v4 = vpop.f32.mrb[15].mxu1 }
 0x251   : > { %632 = vst [vmem:[%s1647_s11 + $0x38] sm:$0xff] %v567_v3 }
 0x252   : > { %v571_v5 = vpop.f32.mrb[16].mxu1 }
 0x253   : > { %v572_v6 = vadd.f32 %v1642_v44, %v571_v5  ;;  %v982_v7 = vpop.f32.mrb[17].mxu1 }
 0x255   : > { %633 = vst [vmem:[%s1647_s11 + $0x40] sm:$0xff] %v572_v6 }
 0x256   : > { %v576_v8 = vpop.f32.mrb[18].mxu1 }
 0x257   : > { %v577_v9 = vadd.f32 %v1642_v44, %v576_v8  ;;  %v985_v10 = vpop.f32.mrb[19].mxu1 }
 0x259   : > { %634 = vst [vmem:[%s1647_s11 + $0x48] sm:$0xff] %v577_v9 }
 0x25a   : > { %v581_v11 = vpop.f32.mrb[20].mxu1 }
 0x25b   : > { %v582_v12 = vadd.f32 %v1642_v44, %v581_v11  ;;  %v988_v13 = vpop.f32.mrb[21].mxu1 }
 0x25d   : > { %635 = vst [vmem:[%s1647_s11 + $0x50] sm:$0xff] %v582_v12 }
 0x25e   : > { %v586_v14 = vpop.f32.mrb[22].mxu1 }
 0x25f   : > { %v587_v15 = vadd.f32 %v1642_v44, %v586_v14  ;;  %v991_v16 = vpop.f32.mrb[23].mxu1 }
 0x261   : > { %636 = vst [vmem:[%s1647_s11 + $0x58] sm:$0xff] %v587_v15 }
 0x262   : > { %v591_v17 = vpop.f32.mrb[24].mxu1 }
 0x263   : > { %v592_v18 = vadd.f32 %v1642_v44, %v591_v17  ;;  %v994_v19 = vpop.f32.mrb[25].mxu1 }
 0x265   : > { %637 = vst [vmem:[%s1647_s11 + $0x60] sm:$0xff] %v592_v18 }
 0x266   : > { %v596_v20 = vpop.f32.mrb[26].mxu1 }
 0x267   : > { %v597_v21 = vadd.f32 %v1642_v44, %v596_v20  ;;  %v997_v22 = vpop.f32.mrb[27].mxu1 }
 0x269   : > { %638 = vst [vmem:[%s1647_s11 + $0x68] sm:$0xff] %v597_v21 }
 0x26a   : > { %v601_v23 = vpop.f32.mrb[28].mxu1 }
 0x26b   : > { %v602_v24 = vadd.f32 %v1642_v44, %v601_v23  ;;  %v1000_v25 = vpop.f32.mrb[29].mxu1 }
 0x26d   : > { %639 = vst [vmem:[%s1647_s11 + $0x70] sm:$0xff] %v602_v24 }
 0x26e   : > { %v606_v26 = vpop.f32.mrb[30].mxu1 }
 0x26f   : > { %v607_v27 = vadd.f32 %v1642_v44, %v606_v26  ;;  %v1003_v28 = vpop.f32.mrb[31].mxu1 }
 0x271   : > { %640 = vst [vmem:[%s1647_s11 + $0x78] sm:$0xff] %v607_v27 }
 0x272   : > { %v611_v29 = vpop.f32.mrb[32].mxu1 }
 0x273   : > { %v612_v30 = vadd.f32 %v1642_v44, %v611_v29  ;;  %v1006_v31 = vpop.f32.mrb[33].mxu1 }
 0x275   : > { %641 = vst [vmem:[%s1647_s11 + $0x80] sm:$0xff] %v612_v30 }
 0x276   : > { %v616_v32 = vpop.f32.mrb[34].mxu1 }
 0x277   : > { %v617_v33 = vadd.f32 %v1642_v44, %v616_v32  ;;  %v1009_v34 = vpop.f32.mrb[35].mxu1 }
 0x279   : > { %642 = vst [vmem:[%s1647_s11 + $0x88] sm:$0xff] %v617_v33 }
 0x27a   : > { %v621_v35 = vpop.f32.mrb[36].mxu1 }
 0x27b   : > { %v622_v36 = vadd.f32 %v1642_v44, %v621_v35  ;;  %v1012_v37 = vpop.f32.mrb[37].mxu1 }
 0x27d   : > { %643 = vst [vmem:[%s1647_s11 + $0x90] sm:$0xff] %v622_v36 }
 0x27e   : > { %1236 = shalt.err (!%p1233_p1)
}
 0x27f   : > { %s1237_s9 = scalar_lea.hbm %s1689_s29, 2432  ;;  %s1241_s27 = scalar_lea.hbm %s1741_s4, 4864 }
 0x280   : > { %p1238_p13 = scmp.ne.s32.totalorder %s1689_s29, %s1237_s9  ;;  %p1242_p4 = scmp.lt.u32.totalorder %s1689_s29, %s1741_s4 }
 0x281   : > { %p1243_p5 = scmp.lt.u32.totalorder %s1241_s27, %s1237_s9  ;;  %p1245_p11 = scmp.lt.u32.totalorder %s1237_s9, %s1689_s29 }
 0x282   : > { %p1239_p6 = pnand %p1238_p13, %p1755_p0 }
 0x283   : > { %p1244_p8 = por %p1243_p5, %p1242_p4 }
 0x284   : > { %p1240_p10 = pneg %p1239_p6 }
 0x285   : > { %p1246_p2 = por %p1245_p11, %p1244_p8 }
 0x287   : > { %p1247_p3 = pnand %p1246_p2, %p1240_p10 }
 0x289   : > { %1250 = shalt.err (!%p1247_p3)
}
 0x28a   : > { %s1304_s11 = smov 128   ;;  %s1305_s12 = smov 8  }
 0x28b   : > { %1073 = dma.vmem_to_hbm [thread:$0]  (%p1755_p0), %s1691_s5, 2432, %s1689_s29, %s645_s19, %s1304_s11, %s1304_s11, %s1305_s12  }
 0x28c PF: > { %s673_s25 = sand.u32 1, %s1281_s15   ;;  %p1756_p7 = scmp.ne.s32.totalorder %s1746_s22, 0 }
 0x28d   : > { %p1757_p9 = scmp.ge.s32.totalorder %s1293_s18, 2  ;;  %s674_s7 = scalar_lea.sflag [#allocation4], %s673_s25 }
 0x28f   : > { %p1087_p12 = pnand %p1757_p9, %p1756_p7 }
 0x291   : > { %1276 = dma.done.wait (!%p1087_p12), %s674_s7, 2432  }
 0x292   : > { %1278 = vsyncadd (!%p1087_p12), %s674_s7, 4294964864  ;;  %p18_p1 = scmp.ge.s32.totalorder %s1447_s26, 4   ;;  %s1758_s15 = smov %s1285_s16 }
 0x293   : > { %s1759_s16 = smov %s1289_s17  ;;  %s1760_s17 = smov %s1463_s14 }
 0x294   : > { %s1761_s18 = smov %s1447_s26  ;;  %20 = sbr.rel (!%p18_p1) target bundleno = 6 (0x6), region = 89 }
 0x29b   :  { %679 = vsyncpa [#allocation3], 1 }
 0x29c   :  { %681 = vsyncpa [#allocation3 + $0x1], 1 }
 0x29d   :  { %682 = vsyncpa [#allocation6], 1 }
 0x29e   :  { %683 = vsyncpa [#allocation4], 1 }
 0x29f   :  { %685 = vsyncpa [#allocation4 + $0x1], 1 }

</bundles_post_ra>
